<compile_context>
chip_gen: v7x
topology: tpu7x:2x2x1
jax: 0.10.0
libtpu: 0.0.40
codegen_flags: <defaults>
</compile_context>

<pallas_src>
import jax
import jax.numpy as jnp
from jax.experimental import pallas as pl
from jax.experimental.pallas import tpu as pltpu

D = 10  # feature dim of every Linear(10, 10); batch is also 10 (as in the test)
HP = jax.lax.Precision.HIGHEST  # host-side folding + reference only


def toy_kernel(lhs_ref, slab_ref, b_ref, out_ref, newb_ref):
    lhs = lhs_ref[...]  # (D, 3D) = [x | y | I_D], packed once by the wrapper
    # Single MXU pass: x @ W1_eff + y @ W2_eff + I_D @ c  ==  p + seq1(x) + seq2(y)
    out_ref[...] = jnp.dot(lhs, slab_ref[...], preferred_element_type=jnp.float32)
    # no-grad buffer update: b += x.sum() + y.sum()  (exclude the identity block's lanes)
    newb_ref[0] = b_ref[0] + jnp.sum(lhs[:, : 2 * D])


def toy_forward(x, y, packed_params, b):
    """Returns (output, updated_b), mirroring ToyModel.forward + its buffer side effect."""
    # One lane-contiguous VMEM input instead of two separate x/y tensors.
    lhs = jnp.concatenate([x, y, jnp.eye(D, dtype=x.dtype)], axis=-1)  # (D, 3D)
    out, new_b = pl.pallas_call(
        toy_kernel,
        out_shape=(
            jax.ShapeDtypeStruct((D, D), jnp.float32),
            jax.ShapeDtypeStruct((1,), jnp.float32),
        ),
        in_specs=[
            pl.BlockSpec(memory_space=pltpu.MemorySpace.VMEM),   # packed [x | y | I]
            pl.BlockSpec(memory_space=pltpu.MemorySpace.VMEM),   # flat param slab (3D, D)
            pl.BlockSpec(memory_space=pltpu.MemorySpace.SMEM),   # b (scalar buffer)
        ],
        out_specs=(
            pl.BlockSpec(memory_space=pltpu.MemorySpace.VMEM),   # out
            pl.BlockSpec(memory_space=pltpu.MemorySpace.SMEM),   # new_b
        ),
        input_output_aliases={2: 1},  # b buffer updated in place (input 2 -> output 1)
    )(lhs, packed_params, b)
    return out, new_b


def init_params(key):
    """Deterministic synthetic init matching PyTorch shapes: Linear weight (out,in), bias (out,)."""
    keys = jax.random.split(key, 9)

    def linear(kw, kb):
        bound = 1.0 / jnp.sqrt(D)
        w = jax.random.uniform(kw, (D, D), jnp.float32, -bound, bound)
        bb = jax.random.uniform(kb, (D,), jnp.float32, -bound, bound)
        return w, bb

    seq1_0 = linear(keys[0], keys[1])
    seq1_1 = linear(keys[2], keys[3])
    seq2_0 = linear(keys[4], keys[5])
    seq2_1 = linear(keys[6], keys[7])
    p = jax.random.normal(keys[8], (D, D), jnp.float32)
    return (seq1_0, seq1_1, seq2_0, seq2_1, p)


def pack_params(params):
    """Run ONCE at init: fold each Linear->Linear chain and pack everything into one
    flat (3D, D) slab [W1_eff ; W2_eff ; c].  Re-fold if the params are ever updated."""
    (w1a, b1a), (w1b, b1b), (w2a, b2a), (w2b, b2b), p = params

    # (x @ Wa.T + ba) @ Wb.T + bb == x @ (Wa.T @ Wb.T) + (ba @ Wb.T + bb)
    w1_eff = jnp.dot(w1a.T, w1b.T, precision=HP)
    b1_eff = jnp.dot(b1a, w1b.T, precision=HP) + b1b
    w2_eff = jnp.dot(w2a.T, w2b.T, precision=HP)
    b2_eff = jnp.dot(b2a, w2b.T, precision=HP) + b2b

    c = p + b1_eff[None, :] + b2_eff[None, :]
    return jnp.concatenate([w1_eff, w2_eff, c], axis=0)  # (3D, D) single flat f32 slab


def reference_forward(x, y, params, b):
    (w1a, b1a), (w1b, b1b), (w2a, b2a), (w2b, b2b), p = params
    h = jnp.dot(jnp.dot(x, w1a.T, precision=HP) + b1a, w1b.T, precision=HP) + b1b
    g = jnp.dot(jnp.dot(y, w2a.T, precision=HP) + b2a, w2b.T, precision=HP) + b2b
    return p + h + g, b + (x.sum() + y.sum()).reshape(1)


if __name__ == "__main__":
    key = jax.random.PRNGKey(0)
    k_params, kx, ky = jax.random.split(key, 3)

    params = init_params(k_params)
    packed = jax.block_until_ready(pack_params(params))  # folding hoisted out of the hot path

    b = jnp.zeros((1,), jnp.float32)  # ToyModel.b buffer
    x = jax.random.normal(kx, (D, D), jnp.float32)
    y = jax.random.normal(ky, (D, D), jnp.float32)

    # Reference first: the kernel aliases (donates) b's buffer in place, so don't reuse b after.
    ref_out, ref_b = reference_forward(x, y, params, b)
    ref_out, ref_b = jax.block_until_ready((ref_out, ref_b))

    out, new_b = toy_forward(x, y, packed, b)
    out = jax.block_until_ready(out)
    new_b = jax.block_until_ready(new_b)

    assert jnp.allclose(out, ref_out, atol=1e-4, rtol=1e-4)
    assert jnp.allclose(new_b, ref_b, atol=1e-3, rtol=1e-4)

    print("KERNEL_OK")
</pallas_src>

<mosaic_0001>
module attributes {stable_mosaic.version = 11 : i64} {
  func.func @toy_kernel(%arg0: memref<10x30xf32, #tpu.memory_space<vmem>>, %arg1: memref<30x10xf32, #tpu.memory_space<vmem>>, %arg2: memref<1xf32, #tpu.memory_space<smem>>, %arg3: memref<10x10xf32, #tpu.memory_space<vmem>>, %arg4: memref<1xf32, #tpu.memory_space<smem>>) attributes {dimension_semantics = [], scalar_prefetch = 0 : i64, scratch_operands = 0 : i64, tpu.core_type = #tpu.core_type<tc>} {
    %c0 = arith.constant 0 : index
    %c0_0 = arith.constant 0 : index
    %0 = vector.load %arg0[%c0, %c0_0] : memref<10x30xf32, #tpu.memory_space<vmem>>, vector<10x30xf32>
    %c0_1 = arith.constant 0 : index
    %c0_2 = arith.constant 0 : index
    %1 = vector.load %arg1[%c0_1, %c0_2] : memref<30x10xf32, #tpu.memory_space<vmem>>, vector<30x10xf32>
    %cst = arith.constant dense<0.000000e+00> : vector<10x10xf32>
    %2 = tpu.matmul %0, %1, %cst {dimension_numbers = #tpu.dot_dimension_numbers<[1], [0], [0], [1], [0, 0, 1, 1], [], []>} : vector<10x30xf32>, vector<30x10xf32>, vector<10x10xf32> -> vector<10x10xf32>
    %c0_3 = arith.constant 0 : index
    %c0_4 = arith.constant 0 : index
    %3 = vector.load %arg3[%c0_3, %c0_4] : memref<10x10xf32, #tpu.memory_space<vmem>>, vector<10x10xf32>
    tpu.vector_store %arg3[%c0_3, %c0_4], %2 {strides = array<i32>} : memref<10x10xf32, #tpu.memory_space<vmem>>, vector<10x10xf32>,
    %c0_5 = arith.constant 0 : index
    %4 = memref.load %arg2[%c0_5] : memref<1xf32, #tpu.memory_space<smem>>
    %5 = vector.extract_strided_slice %0 {offsets = [0, 0], sizes = [10, 20], strides = [1, 1]} : vector<10x30xf32> to vector<10x20xf32>
    %6 = vector.shape_cast %5 : vector<10x20xf32> to vector<1x10x20xf32>
    %cst_6 = arith.constant dense<0.000000e+00> : vector<1xf32>
    %7 = vector.multi_reduction <add>, %6, %cst_6 [1, 2] : vector<1x10x20xf32> to vector<1xf32>
    %8 = vector.shape_cast %7 : vector<1xf32> to vector<1x1x1xf32>
    %9 = vector.extract %8[0, 0, 0] : f32 from vector<1x1x1xf32>
    %10 = arith.addf %4, %9 : f32
    %c0_7 = arith.constant 0 : index
    %11 = memref.load %arg4[%c0_7] : memref<1xf32, #tpu.memory_space<smem>>
    memref.store %10, %arg4[%c0_7] : memref<1xf32, #tpu.memory_space<smem>>
    return
  }
}

</mosaic_0001>

<bundles_post_ra>
// kernel: tpu_custom_call.1
= control target key start
LH: loop header
LB: loop body
LE: loop exit
PB: predicated region body
PF: predicated region fallthrough
CT: control target
= control target key end

     0   :  { %11 = vsyncpa [#allocation4], 0  ;;  %vm32_vm0 = vcmask 1045504   ;;  %vm25_vm1 = vcmask 244736   ;;  %vm235_vm2 = vmmov 1   ;;  %vm116_vm4 = vcmask 162816   ;;  %s312_s0 = inlined_call_operand.vmem [shape: f32[10,30], index: 0, kind: input, shape index: {}]   ;;  %s313_s1 = inlined_call_operand.vmem [shape: f32[30,10], index: 1, kind: input, shape index: {}]   ;;  %s314_s2 = inlined_call_operand.<no memory space> [shape: f32[1], index: 2, kind: input, shape index: {}, may-alias: {2,4}]   ;;  %s315_s3 = inlined_call_operand.hbm [shape: f32[10,10], index: 3, kind: output, shape index: {0}]   ;;  %s316_s4 = inlined_call_operand.hbm [shape: f32[1], index: 4, kind: output, shape index: {1}, may-alias: {2,4}]  }
   0x1   :  { %v21_v0 = vld [vmem:[%s313_s1] sm:$0xff]  ;;  %v22_v1 = vld [vmem:[%s313_s1 + $0x8] sm:$0xff]  ;;  %v23_v2 = vld [vmem:[%s313_s1 + $0x10] sm:$0xff]  ;;  %vm118_vm5 = vcmask 156672  }
   0x2   :  { %v182_v3 = vpack.c.bf16 %v22_v1, %v21_v0  ;;  %v24_v4 = vld [vmem:[%s313_s1 + $0x18] sm:$0x3f]  ;;  %vm187_vm3 = vmpackc.low %vm32_vm0, %vm235_vm2  ;;  %v19_v5 = vld [vmem:[%s312_s0] sm:$0xff] }
   0x3   :  { %v186_v6 = vpack.c.bf16 %v24_v4, %v23_v2  ;;  %179 = vmatprep.mubr.msk.f32.mxu0 %vm25_vm1, %v19_v5  ;;  %v20_v7 = vld [vmem:[%s312_s0 + $0x8] sm:$0x3]  ;;  %v117_v8 = vsel %vm116_vm4, %v19_v5, 0.0 }
   0x4   :  { %12 = vsyncpa [#allocation5], 0  ;;  %183 = vmatprep.subr.bf16.mxu0 %v182_v3  ;;  %v119_v9 = vsel %vm118_vm5, %v20_v7, 0.0  ;;  %s199_s5 = scalar_lea.hbm %s316_s4, 16 }
   0x5   :  { %185 = vmatpush3.bf16.msra.mxu0 %v182_v3  ;;  %v120_v10 = vadd.f32 %v119_v9, %v117_v8  ;;  %p200_p0 = scmp.ne.s32.totalorder %s316_s4, %s199_s5  ;;  %p203_p1 = scmp.lt.u32.totalorder %s199_s5, %s316_s4 }
   0x6   :  { %188 = vmatprep.subr.msk.bf16.mxu0 %vm187_vm3, %v186_v6 }
   0x7   :  { %121 = vadd.xlane.f32.xlu0 %v120_v10  ;;  %p205_p2 = pnand %p203_p1, %p200_p0 }
   0x9   :  { %191 = vmatpush3.bf16.msk.msra.mxu0 %vm187_vm3, %v186_v6 }
   0xc   :  { %180 = vmatmul.mubr.msk.f32.vlgmr.msra.gmra.mrb[0].mxu0 %vm25_vm1, %v20_v7 }
  0x94   :  { %v122_v11 = vpop.xlane.xlu0 %121 }
  0x95   :  { %v123_v12 = vrot.slane %v122_v11, 4 }
  0x97   :  { %v124_v13 = vadd.f32 %v123_v12, %v122_v11 }
  0x99   :  { %v125_v14 = vrot.slane %v124_v13, 2 }
  0x9b   :  { %v126_v15 = vadd.f32 %v125_v14, %v124_v13 }
  0x9d   :  { %v127_v16 = vrot.slane %v126_v15, 1 }
  0x9f   :  { %v128_v17 = vadd.f32 %v127_v16, %v126_v15 }
  0xa1   :  { %192 = vpush %v128_v17 }
  0xd2   :  { %s193_s0 = spop %192 }
  0xd3   :  { %s130_s28 = sadd.f32 %s193_s0, %s314_s2 }
  0xd5   :  { %132 = sst [smem:[#allocation6]] %s130_s28 }
  0xd6   :  { %208 = shalt.err (!%p205_p2)
}
  0xd7   :  { %s236_s10 = smov [#allocation6]   ;;  %s237_s2 = smov [#allocation3]   ;;  %vm113_vm6 = vcmask 74752   ;;  %vm111_vm7 = vcmask 80896  }
  0xd8   :  { %152 = dma.smem_to_hbm %s236_s10, 16, %s316_s4, [#allocation5]  }
  0xd9   :  { %s138_s13 = sshll.u32 %s237_s2, 4  ;;  %s139_s13 = int_to_ptr.vmem [resolvable:$true] %s138_s13 }
  0xda   :  { %s209_s14 = scalar_lea.vmem %s139_s13, 256  ;;  %p214_p4 = scmp.lt.s32.totalorder %s139_s13, %s139_s13 }
  0xdb   :  { %p210_p3 = scmp.ne.s32.totalorder %s139_s13, %s209_s14  ;;  %p215_p5 = scmp.lt.s32.totalorder %s209_s14, %s209_s14 }
  0xdd   :  { %p216_p6 = por %p215_p5, %p214_p4 }
  0xdf   :  { %v181_v18 = vpop.f32.mrb[0].mxu0  ;;  %p217_p7 = pnand %p216_p6, %p210_p3 }
  0xe0   :  { %114 = vst.msk [vmem:[#allocation3 + $0x8] sm:$0x3] %vm113_vm6, %v181_v18  ;;  %v102_v19 = vpop.f32.mrb[1].mxu0 }
  0xe1   :  { %112 = vst.msk [vmem:[#allocation3] sm:$0xff] %vm111_vm7, %v102_v19 }
  0xe2   :  { %220 = shalt.err (!%p217_p7)
}
  0xe3   :  { %s221_s4 = scalar_lea.hbm %s315_s3, 256 }
  0xe4   :  { %p222_p8 = scmp.ne.s32.totalorder %s315_s3, %s221_s4  ;;  %p225_p9 = scmp.lt.u32.totalorder %s221_s4, %s315_s3 }
  0xe6   :  { %p227_p10 = pnand %p225_p9, %p222_p8 }
  0xe8   :  { %230 = shalt.err (!%p227_p10)
}
  0xe9   :  { %s238_s21 = smov 128   ;;  %s239_s22 = smov 8  }
  0xea   :  { %144 = dma.vmem_to_hbm [thread:$0]  %s139_s13, 256, %s315_s3, [#allocation4], %s238_s21, %s238_s21, %s239_s22  }
  0xeb   :  { %231 = dma.done.wait [#allocation4], 256  }
  0xec   :  { %232 = vsyncadd [#allocation4], 4294967040 }
  0xed   :  { %233 = dma.done.wait [#allocation5], 16  }
  0xee   :  { %234 = vsyncadd [#allocation5], 4294967280 }
  0xef   :  { %159 = sfence }
  0xf0   :  { %160 = vsyncpa [#allocation4], 1 }
  0xf1   :  { %161 = vsyncpa [#allocation5], 1 }

</bundles_post_ra>
